<compile_context>
chip_gen: v5e
topology: v5e:2x2
jax: 0.10.0
libtpu: 0.0.40
codegen_flags: <defaults>
</compile_context>

<pallas_src>
import numpy as np
import jax
import jax.numpy as jnp
from jax.experimental import pallas as pl
from jax.experimental.pallas import tpu as pltpu

_LANES = 128
_SUBLANES = 8


# ----------------------------- Pallas kernel --------------------------------
def _normalize_kernel(x_ref, s_ref, o_ref):
    # x_ref : (block_rows, F_pad) feature tile
    # s_ref : (1, F_pad) per-column reciprocal scale (1, 1/half_w, 1/half_h)
    # Pure VPU broadcast multiply -- no MXU involved.
    o_ref[...] = x_ref[...] * s_ref[...]


# ------------------------------ setup / glue ---------------------------------
def _round_up(x, m):
    return ((x + m - 1) // m) * m


def build_scale_vector(feat_dim, im_w, im_h):
    """Static per-column reciprocal scale for feat_version 3.

    Mirrors the index arithmetic of NormalizeFromCenter.forward (version 3):
      cols 1,4        -> / half_w          cols 2,5        -> / half_h
      cols 10,15,...  -> / half_w          cols 11,16,...  -> / half_h
    """
    half_w = im_w / 2.0
    half_h = im_h / 2.0
    s = np.ones((feat_dim,), dtype=np.float32)
    for x_idx, y_idx in zip([1, 4], [2, 5]):
        s[x_idx] = 1.0 / half_w
        s[y_idx] = 1.0 / half_h
    start = 10
    while start < feat_dim:
        s[start] = 1.0 / half_w
        if start + 1 < feat_dim:
            s[start + 1] = 1.0 / half_h
        start += 5
    return s


def normalize_from_center(features, im_w, im_h, feat_version, *, block_rows=512):
    """Batched forward: features is (N, F) with N = num_windows * window_size."""
    if feat_version in (1, 2, 5):
        # Reference forward is a no-op for these versions.
        return features
    if feat_version != 3:
        raise NotImplementedError(f"Unhandled version '{feat_version}'")

    features = features.astype(jnp.float32)
    N, F = features.shape
    scale = jnp.asarray(build_scale_vector(F, im_w, im_h))

    # Lane-dense feature axis (multiple of 128) and sublane-aligned row tiles.
    F_pad = _round_up(max(F, _LANES), _LANES)
    br = max(_SUBLANES, min(_round_up(block_rows, _SUBLANES),
                            _round_up(N, _SUBLANES)))
    N_pad = _round_up(N, br)

    # Zero-pad features (padded columns/rows stay zero under the multiply);
    # pad scale with 1.0 (value irrelevant -- padded region sliced off below).
    x = jnp.pad(features, ((0, N_pad - N), (0, F_pad - F)))
    s = jnp.pad(scale[None, :], ((0, 0), (0, F_pad - F)), constant_values=1.0)

    grid = (N_pad // br,)
    out = pl.pallas_call(
        _normalize_kernel,
        out_shape=jax.ShapeDtypeStruct((N_pad, F_pad), jnp.float32),
        grid_spec=pltpu.PrefetchScalarGridSpec(
            num_scalar_prefetch=0,
            grid=grid,
            in_specs=[
                pl.BlockSpec((br, F_pad), lambda i: (i, 0)),
                # Same block index every step -> scale row DMA'd once, resident.
                pl.BlockSpec((1, F_pad), lambda i: (0, 0)),
            ],
            out_specs=pl.BlockSpec((br, F_pad), lambda i: (i, 0)),
        ),
        compiler_params=pltpu.CompilerParams(
            dimension_semantics=("parallel",)),
        # NOTE: if the caller does not need `features` afterwards,
        # input_output_aliases={0: 0} would write the result in place.
    )(x, s)
    return out[:N, :F]


# ------------------------------- reference -----------------------------------
def reference_forward(features, im_w, im_h, feat_version):
    """NumPy port of NormalizeFromCenter.forward (on a copy, not in place)."""
    f = np.array(features, dtype=np.float32, copy=True)
    half_w = im_w / 2.0
    half_h = im_h / 2.0
    if feat_version in (1, 2, 5):
        return f
    if feat_version == 3:
        for start_idx, end_idx in zip([1, 4], [2, 5]):
            f[:, start_idx] = f[:, start_idx] / half_w
            f[:, end_idx] = f[:, end_idx] / half_h
        start_idx = 10
        while start_idx < f.shape[1]:
            f[:, start_idx] = f[:, start_idx] / half_w
            if start_idx + 1 < f.shape[1]:
                f[:, start_idx + 1] = f[:, start_idx + 1] / half_h
            start_idx += 5
        return f
    raise NotImplementedError(f"Unhandled version '{feat_version}'")


if __name__ == "__main__":
    # Module config (feat_version = 3)
    im_w, im_h = 1280, 720
    feat_version = 3
    num_windows = 4
    window_size = 8
    feat_dim = 30            # [conf, rx, ry, conf, lx, ly, ...] + 4 objects * 5

    key = jax.random.PRNGKey(0)
    k_feat, = jax.random.split(key, 1)
    feats = jax.random.uniform(
        k_feat, (num_windows * window_size, feat_dim),
        dtype=jnp.float32, minval=-float(im_w), maxval=float(im_w))

    out = normalize_from_center(feats, im_w, im_h, feat_version)
    out = jax.block_until_ready(out)

    ref = reference_forward(np.asarray(feats), im_w, im_h, feat_version)
    np.testing.assert_allclose(np.asarray(out), ref, rtol=1e-5, atol=1e-5)

    # No-op versions pass straight through.
    noop = normalize_from_center(feats, im_w, im_h, feat_version=2)
    np.testing.assert_allclose(np.asarray(noop), np.asarray(feats))

    print("KERNEL_OK")
</pallas_src>

<mosaic_0001>
module attributes {stable_mosaic.version = 11 : i64} {
  func.func @_normalize_kernel(%arg0: i32, %arg1: memref<32x128xf32, #tpu.memory_space<vmem>>, %arg2: memref<1x128xf32, #tpu.memory_space<vmem>>, %arg3: memref<32x128xf32, #tpu.memory_space<vmem>>) attributes {dimension_semantics = [#tpu.dimension_semantics<parallel>], iteration_bounds = array<i64: 1>, scalar_prefetch = 0 : i64, scratch_operands = 0 : i64, tpu.core_type = #tpu.core_type<tc>, window_params = [{transform_indices = @transform_0, window_bounds = array<i64: 32, 128>}, {pipeline_mode = #tpu.pipeline_mode<synchronous>, transform_indices = @transform_1, window_bounds = array<i64: 1, 128>}, {transform_indices = @transform_2, window_bounds = array<i64: 32, 128>}]} {
    %c0 = arith.constant 0 : index
    %c0_0 = arith.constant 0 : index
    %0 = vector.load %arg1[%c0, %c0_0] : memref<32x128xf32, #tpu.memory_space<vmem>>, vector<32x128xf32>
    %c0_1 = arith.constant 0 : index
    %c0_2 = arith.constant 0 : index
    %1 = vector.load %arg2[%c0_1, %c0_2] : memref<1x128xf32, #tpu.memory_space<vmem>>, vector<1x128xf32>
    %2 = vector.broadcast %1 : vector<1x128xf32> to vector<32x128xf32>
    %3 = arith.mulf %0, %2 : vector<32x128xf32>
    %c0_3 = arith.constant 0 : index
    %c0_4 = arith.constant 0 : index
    %4 = vector.load %arg3[%c0_3, %c0_4] : memref<32x128xf32, #tpu.memory_space<vmem>>, vector<32x128xf32>
    tpu.vector_store %arg3[%c0_3, %c0_4], %3 {strides = array<i32>} : memref<32x128xf32, #tpu.memory_space<vmem>>, vector<32x128xf32>,
    return
  }
  func.func @transform_0(%arg0: i32) -> (i32, i32) {
    %c0_i32 = arith.constant 0 : i32
    %c0_i32_0 = arith.constant 0 : i32
    return %arg0, %c0_i32 : i32, i32
  }
  func.func @transform_1(%arg0: i32) -> (i32, i32) {
    %c0_i32 = arith.constant 0 : i32
    %c0_i32_0 = arith.constant 0 : i32
    %c0_i32_1 = arith.constant 0 : i32
    return %c0_i32, %c0_i32_0 : i32, i32
  }
  func.func @transform_2(%arg0: i32) -> (i32, i32) {
    %c0_i32 = arith.constant 0 : i32
    %c0_i32_0 = arith.constant 0 : i32
    return %arg0, %c0_i32 : i32, i32
  }
}

</mosaic_0001>

<bundles_post_ra>
// kernel: tpu_custom_call.1
= control target key start
LH: loop header
LB: loop body
LE: loop exit
PB: predicated region body
PF: predicated region fallthrough
CT: control target
= control target key end

     0   :  { %7 = vsyncpa [#allocation3], 0  ;;  %s197_s0 = inlined_call_operand.hbm [shape: f32[32,128], index: 0, kind: input, shape index: {}]   ;;  %s198_s1 = inlined_call_operand.hbm [shape: f32[1,128], index: 1, kind: input, shape index: {}]   ;;  %s199_s2 = inlined_call_operand.hbm [shape: f32[32,128], index: 2, kind: output, shape index: {}]  }
   0x1   :  { %8 = vsyncpa [#allocation6], 0 }
   0x2   :  { %9 = vsyncpa [#allocation4], 0  ;;  %s14_s11 = sshll.u32 %s197_s0, 4  ;;  %s162_s12 = smov [#allocation2]   ;;  %s15_s11 = int_to_ptr.hbm [resolvable:$true] %s14_s11 }
   0x3   :  { %s16_s13 = sshll.u32 %s162_s12, 4  ;;  %s28_s16 = sshll.u32 %s198_s1, 4  ;;  %s17_s13 = int_to_ptr.vmem [resolvable:$true] %s16_s13  ;;  %s29_s16 = int_to_ptr.hbm [resolvable:$true] %s28_s16 }
   0x4   :  { %s163_s17 = smov 128   ;;  %s164_s18 = smov 8  }
   0x5   :  { %22 = dma.hbm_to_vmem [thread:$0]  %s15_s11, 512, %s17_s13, [#allocation3], %s163_s17, %s163_s17, %s164_s18  }
   0x6   :  { %s165_s19 = smov [#allocation5]  }
   0x7   :  { %s30_s20 = sshll.u32 %s165_s19, 4  ;;  %s31_s20 = int_to_ptr.vmem [resolvable:$true] %s30_s20 }
   0x8   :  { %33 = dma.hbm_to_vmem [thread:$0]  %s29_s16, 16, %s31_s20, [#allocation6]  }
   0x9   :  { %156 = dma.done.wait [#allocation3], 512  }
   0xa   :  { %157 = vsyncadd [#allocation3], 4294966784 }
   0xb   :  { %158 = dma.done.wait [#allocation6], 16  }
   0xc   :  { %159 = vsyncadd [#allocation6], 4294967280  ;;  %v42_v0 = vld [vmem:[#allocation2] sm:$0xff]  ;;  %v43_v2 = vld [vmem:[#allocation2 + $0x8] sm:$0xff]  ;;  %s166_s0 = smov [#allocation7]   ;;  %s64_s23 = sshll.u32 %s199_s2, 4  ;;  %s65_s23 = int_to_ptr.hbm [resolvable:$true] %s64_s23 }
   0xd   :  { %v83_v1 = vld [vmem:[#allocation5] ss:$0 sm:$0xff]  ;;  %v44_v3 = vld [vmem:[#allocation2 + $0x10] sm:$0xff]  ;;  %v45_v4 = vld [vmem:[#allocation2 + $0x18] sm:$0xff]  ;;  %s62_s1 = sshll.u32 %s166_s0, 4  ;;  %s63_s1 = int_to_ptr.vmem [resolvable:$true] %s62_s1 }
   0xe   :  { %v50_v5 = vmul.f32 %v83_v1, %v42_v0  ;;  %v51_v6 = vmul.f32 %v83_v1, %v43_v2  ;;  %v52_v7 = vmul.f32 %v83_v1, %v44_v3  ;;  %v53_v8 = vmul.f32 %v83_v1, %v45_v4 }
  0x10   :  { %54 = vst [vmem:[#allocation7] sm:$0xff] %v50_v5 }
  0x11   :  { %55 = vst [vmem:[#allocation7 + $0x8] sm:$0xff] %v51_v6 }
  0x12   :  { %56 = vst [vmem:[#allocation7 + $0x10] sm:$0xff] %v52_v7 }
  0x13   :  { %57 = vst [vmem:[#allocation7 + $0x18] sm:$0xff] %v53_v8 }
  0x14   :  { %70 = dma.vmem_to_hbm [thread:$0]  %s63_s1, 512, %s65_s23, [#allocation4], %s163_s17, %s163_s17, %s164_s18  }
  0x15   :  { %160 = dma.done.wait [#allocation4], 512  }
  0x16   :  { %161 = vsyncadd [#allocation4], 4294966784 }
  0x17   :  { %75 = vsyncpa [#allocation3], 1 }
  0x18   :  { %76 = vsyncpa [#allocation6], 1 }
  0x19   :  { %77 = vsyncpa [#allocation4], 1 }

</bundles_post_ra>
